<compile_context>
chip_gen: v7x
topology: tpu7x:2x2x1
jax: 0.10.0
libtpu: 0.0.40
codegen_flags: <defaults>
</compile_context>

<pallas_src>
import functools

import numpy as np
import jax
import jax.numpy as jnp
from jax.experimental import pallas as pl
from jax.experimental.pallas import tpu as pltpu


def _round_up(n, m):
    return ((n + m - 1) // m) * m


def _cdiv(a, b):
    return (a + b - 1) // b


def _decoder_kernel(x_ref, w1_ref, b1_ref, w2_ref, b2_ref, o_ref):
    # x_ref : (bm, E)  f32 (cast to bf16 here, no host pre-pass)
    # w1_ref: (E, H)   whole-array resident in VMEM
    # b1_ref: (1, H)   whole-array resident in VMEM
    # w2_ref: (H, tn)  pipelined output-column tile
    # b2_ref: (1, tn)  pipelined output-column tile
    # o_ref : (bm, tn) lane-dense store (bf16 by default)
    x = x_ref[...].astype(jnp.bfloat16)
    w1 = w1_ref[...].astype(jnp.bfloat16)
    h = jnp.dot(x, w1, preferred_element_type=jnp.float32)
    h = jnp.maximum(h + b1_ref[...].astype(jnp.float32), 0.0)       # Linear1 + ReLU
    w2 = w2_ref[...].astype(jnp.bfloat16)
    y = jnp.dot(h.astype(jnp.bfloat16), w2, preferred_element_type=jnp.float32)
    y = y + b2_ref[...].astype(jnp.float32)                          # Linear2
    # sigmoid(y) == 0.5 * (tanh(0.5 * y) + 1): single EUP op per element.
    o_ref[...] = (0.5 * (jnp.tanh(0.5 * y) + 1.0)).astype(o_ref.dtype)


@functools.partial(
    jax.jit,
    static_argnames=("block_rows", "max_out_tile", "out_dtype", "trim_output"))
def graph_decoder_forward(x, w1, b1, w2, b2, *, block_rows=256,
                          max_out_tile=2048, out_dtype=jnp.bfloat16,
                          trim_output=True):
    """x: (B, embed_dim) f32 -> (B, output_dim) in `out_dtype` (torch semantics)."""
    B, E = x.shape
    H = w1.shape[1]
    O = w2.shape[1]

    b1 = b1.reshape(1, H)
    b2 = b2.reshape(1, O)

    # --- output-column tiling: lane-dense stores, bounded VMEM for huge O ---
    n_col_tiles = max(1, _cdiv(O, max_out_tile))
    tn = _round_up(_cdiv(O, n_col_tiles), 128)
    Op = tn * n_col_tiles
    if Op != O:
        # Zero padding is inert: padded cols give sigmoid(0)=0.5, sliced off.
        w2 = jnp.pad(w2, ((0, 0), (0, Op - O)))
        b2 = jnp.pad(b2, ((0, 0), (0, Op - O)))

    # --- batch tiling: minimal row padding, >=2 tiles for v7x megacore ------
    n_row_tiles = _cdiv(B, block_rows)
    if B >= 32:
        n_row_tiles = max(n_row_tiles, 2)
    bm = _round_up(_cdiv(B, n_row_tiles), 16)
    bm = min(bm, _round_up(B, 8))
    n_row_tiles = _cdiv(B, bm)

    # Rows are the innermost (fastest) grid axis so the W2 column tile stays
    # resident across the row sweep and x tiles stream underneath it.
    grid = (n_col_tiles, n_row_tiles)

    x_bytes = x.dtype.itemsize
    w1_bytes = w1.dtype.itemsize
    w2_bytes = w2.dtype.itemsize
    out_bytes = np.dtype(out_dtype).itemsize

    # Advisory cost estimate (h is recomputed per column tile; E,H are tiny).
    flops = 2 * B * E * H * n_col_tiles + 2 * B * H * Op
    bytes_accessed = (B * E * x_bytes * n_col_tiles
                      + E * H * w1_bytes + H * Op * w2_bytes
                      + H * 4 + Op * 4
                      + B * Op * out_bytes)
    cost = pl.CostEstimate(flops=int(flops), transcendentals=int(B * Op),
                           bytes_accessed=int(bytes_accessed))

    # VMEM: resident W1/b1 + double-buffered x / W2 / b2 / out tiles + temps.
    est_vmem = (E * H * w1_bytes + H * 4
                + 2 * bm * E * x_bytes
                + 2 * (H * tn * w2_bytes + tn * 4)
                + 2 * bm * tn * out_bytes
                + bm * H * 4 + bm * tn * 4)
    try:
        info = pltpu.get_tpu_info()
        vmem_cap = int(getattr(info, "vmem_capacity_bytes", 64 << 20))
    except Exception:
        vmem_cap = 64 << 20
    vmem_budget = int(0.75 * vmem_cap)            # headroom (v7x: ~48 MiB)
    vmem_limit = max(16 << 20, min(vmem_budget, int(est_vmem * 2)))

    resident = pl.BlockSpec(memory_space=pltpu.MemorySpace.VMEM)

    out = pl.pallas_call(
        _decoder_kernel,
        out_shape=jax.ShapeDtypeStruct((B, Op), out_dtype),
        grid_spec=pltpu.PrefetchScalarGridSpec(
            num_scalar_prefetch=0,
            grid=grid,
            in_specs=[
                pl.BlockSpec((bm, E), lambda j, i: (i, 0)),   # x tile (f32, unpadded)
                resident,                                     # W1 (whole, VMEM)
                resident,                                     # b1 (whole, VMEM)
                pl.BlockSpec((H, tn), lambda j, i: (0, j)),   # W2 column tile
                pl.BlockSpec((1, tn), lambda j, i: (0, j)),   # b2 column tile
            ],
            out_specs=pl.BlockSpec((bm, tn), lambda j, i: (i, j)),  # lane-dense
        ),
        compiler_params=pltpu.CompilerParams(
            dimension_semantics=("parallel", "parallel"),
            vmem_limit_bytes=vmem_limit),
        cost_estimate=cost,
    )(x, w1, b1, w2, b2)

    if trim_output and Op != O:
        out = out[:, :O]
    return out


def init_graph_decoder_params(key, embed_dim, hidden_dim, max_num_nodes,
                              dtype=jnp.float32):
    """Deterministic nn.Linear-style init (uniform(-1/sqrt(fan_in), +))."""
    output_dim = max_num_nodes * (max_num_nodes + 1) // 2
    k1, k2, k3, k4 = jax.random.split(key, 4)
    bound1 = 1.0 / jnp.sqrt(embed_dim)
    bound2 = 1.0 / jnp.sqrt(hidden_dim)
    # Stored as (in, out) so the kernel computes x @ W directly
    # (equivalent to torch's y = x @ W.T + b with W shaped (out, in)).
    w1 = jax.random.uniform(k1, (embed_dim, hidden_dim), dtype,
                            minval=-bound1, maxval=bound1)
    b1 = jax.random.uniform(k2, (1, hidden_dim), dtype,
                            minval=-bound1, maxval=bound1)
    w2 = jax.random.uniform(k3, (hidden_dim, output_dim), dtype,
                            minval=-bound2, maxval=bound2)
    b2 = jax.random.uniform(k4, (1, output_dim), dtype,
                            minval=-bound2, maxval=bound2)
    return w1, b1, w2, b2


if __name__ == "__main__":
    # Small shapes consistent with the module.
    batch = 16
    embed_dim = 32
    hidden_dim = 32
    max_num_nodes = 15               # output_dim = 15 * 16 // 2 = 120

    key = jax.random.PRNGKey(0)
    kx, kp = jax.random.split(key)
    x = jax.random.normal(kx, (batch, embed_dim), dtype=jnp.float32)
    w1, b1, w2, b2 = init_graph_decoder_params(
        kp, embed_dim, hidden_dim, max_num_nodes)

    output_dim = max_num_nodes * (max_num_nodes + 1) // 2

    # Default path: bf16 output (halves HBM writeback).
    out = graph_decoder_forward(x, w1, b1, w2, b2)
    out = jax.block_until_ready(out)
    assert out.shape == (batch, output_dim)
    assert out.dtype == jnp.bfloat16

    # Flagged f32-output path.
    out_f32 = jax.block_until_ready(
        graph_decoder_forward(x, w1, b1, w2, b2, out_dtype=jnp.float32))
    assert out_f32.shape == (batch, output_dim)
    assert out_f32.dtype == jnp.float32

    # Reference: pure f32 torch semantics (tolerance absorbs bf16 matmuls /
    # bf16 output rounding; sigmoid outputs live in (0,1)).
    ref = jax.nn.sigmoid(
        jnp.maximum(x @ w1 + b1.reshape(1, -1), 0.0) @ w2 + b2.reshape(1, -1))
    assert jnp.allclose(out.astype(jnp.float32), ref, atol=3e-2, rtol=3e-2)
    assert jnp.allclose(out_f32, ref, atol=2e-2, rtol=2e-2)

    print("KERNEL_OK")
</pallas_src>

<mosaic_0001>
module attributes {stable_mosaic.version = 11 : i64} {
  func.func @_decoder_kernel(%arg0: i32, %arg1: i32, %arg2: memref<16x32xf32, #tpu.memory_space<vmem>>, %arg3: memref<32x32xf32, #tpu.memory_space<vmem>>, %arg4: memref<1x32xf32, #tpu.memory_space<vmem>>, %arg5: memref<32x128xf32, #tpu.memory_space<vmem>>, %arg6: memref<1x128xf32, #tpu.memory_space<vmem>>, %arg7: memref<16x128xbf16, #tpu.memory_space<vmem>>) attributes {dimension_semantics = [#tpu.dimension_semantics<parallel>, #tpu.dimension_semantics<parallel>], iteration_bounds = array<i64: 1, 1>, scalar_prefetch = 0 : i64, scratch_operands = 0 : i64, tpu.core_type = #tpu.core_type<tc>, window_params = [{transform_indices = @transform_0, window_bounds = array<i64: 16, 32>}, {pipeline_mode = #tpu.pipeline_mode<synchronous>, transform_indices = @transform_1, window_bounds = array<i64: 32, 32>}, {pipeline_mode = #tpu.pipeline_mode<synchronous>, transform_indices = @transform_2, window_bounds = array<i64: 1, 32>}, {transform_indices = @transform_3, window_bounds = array<i64: 32, 128>}, {transform_indices = @transform_4, window_bounds = array<i64: 1, 128>}, {transform_indices = @transform_5, window_bounds = array<i64: 16, 128>}]} {
    %c0 = arith.constant 0 : index
    %c0_0 = arith.constant 0 : index
    %0 = vector.load %arg2[%c0, %c0_0] : memref<16x32xf32, #tpu.memory_space<vmem>>, vector<16x32xf32>
    %1 = arith.truncf %0 : vector<16x32xf32> to vector<16x32xbf16>
    %c0_1 = arith.constant 0 : index
    %c0_2 = arith.constant 0 : index
    %2 = vector.load %arg3[%c0_1, %c0_2] : memref<32x32xf32, #tpu.memory_space<vmem>>, vector<32x32xf32>
    %3 = arith.truncf %2 : vector<32x32xf32> to vector<32x32xbf16>
    %cst = arith.constant dense<0.000000e+00> : vector<16x32xf32>
    %4 = tpu.matmul %1, %3, %cst {dimension_numbers = #tpu.dot_dimension_numbers<[1], [0], [0], [1], [0, 0, 1, 1], [], []>} : vector<16x32xbf16>, vector<32x32xbf16>, vector<16x32xf32> -> vector<16x32xf32>
    %c0_3 = arith.constant 0 : index
    %c0_4 = arith.constant 0 : index
    %5 = vector.load %arg4[%c0_3, %c0_4] : memref<1x32xf32, #tpu.memory_space<vmem>>, vector<1x32xf32>
    %6 = vector.broadcast %5 : vector<1x32xf32> to vector<16x32xf32>
    %7 = arith.addf %4, %6 : vector<16x32xf32>
    %cst_5 = arith.constant 0.000000e+00 : f32
    %8 = vector.broadcast %cst_5 : f32 to vector<16x32xf32>
    %9 = arith.maximumf %7, %8 : vector<16x32xf32>
    %c0_6 = arith.constant 0 : index
    %c0_7 = arith.constant 0 : index
    %10 = vector.load %arg5[%c0_6, %c0_7] : memref<32x128xf32, #tpu.memory_space<vmem>>, vector<32x128xf32>
    %11 = arith.truncf %10 : vector<32x128xf32> to vector<32x128xbf16>
    %12 = arith.truncf %9 : vector<16x32xf32> to vector<16x32xbf16>
    %cst_8 = arith.constant dense<0.000000e+00> : vector<16x128xf32>
    %13 = tpu.matmul %12, %11, %cst_8 {dimension_numbers = #tpu.dot_dimension_numbers<[1], [0], [0], [1], [0, 0, 1, 1], [], []>} : vector<16x32xbf16>, vector<32x128xbf16>, vector<16x128xf32> -> vector<16x128xf32>
    %c0_9 = arith.constant 0 : index
    %c0_10 = arith.constant 0 : index
    %14 = vector.load %arg6[%c0_9, %c0_10] : memref<1x128xf32, #tpu.memory_space<vmem>>, vector<1x128xf32>
    %15 = vector.broadcast %14 : vector<1x128xf32> to vector<16x128xf32>
    %16 = arith.addf %13, %15 : vector<16x128xf32>
    %cst_11 = arith.constant 5.000000e-01 : f32
    %17 = vector.broadcast %cst_11 : f32 to vector<16x128xf32>
    %18 = arith.mulf %17, %16 : vector<16x128xf32>
    %19 = math.tanh %18 : vector<16x128xf32>
    %cst_12 = arith.constant 1.000000e+00 : f32
    %20 = vector.broadcast %cst_12 : f32 to vector<16x128xf32>
    %21 = arith.addf %19, %20 : vector<16x128xf32>
    %cst_13 = arith.constant 5.000000e-01 : f32
    %22 = vector.broadcast %cst_13 : f32 to vector<16x128xf32>
    %23 = arith.mulf %22, %21 : vector<16x128xf32>
    %24 = arith.truncf %23 : vector<16x128xf32> to vector<16x128xbf16>
    %c0_14 = arith.constant 0 : index
    %c0_15 = arith.constant 0 : index
    %25 = vector.load %arg7[%c0_14, %c0_15] : memref<16x128xbf16, #tpu.memory_space<vmem>>, vector<16x128xbf16>
    tpu.vector_store %arg7[%c0_14, %c0_15], %24 {strides = array<i32>} : memref<16x128xbf16, #tpu.memory_space<vmem>>, vector<16x128xbf16>,
    return
  }
  func.func @transform_0(%arg0: i32, %arg1: i32) -> (i32, i32) {
    %c0_i32 = arith.constant 0 : i32
    %c0_i32_0 = arith.constant 0 : i32
    return %arg1, %c0_i32 : i32, i32
  }
  func.func @transform_1(%arg0: i32, %arg1: i32) -> (i32, i32) {
    %c0_i32 = arith.constant 0 : i32
    %c0_i32_0 = arith.constant 0 : i32
    %c0_i32_1 = arith.constant 0 : i32
    return %c0_i32, %c0_i32_0 : i32, i32
  }
  func.func @transform_2(%arg0: i32, %arg1: i32) -> (i32, i32) {
    %c0_i32 = arith.constant 0 : i32
    %c0_i32_0 = arith.constant 0 : i32
    %c0_i32_1 = arith.constant 0 : i32
    return %c0_i32, %c0_i32_0 : i32, i32
  }
  func.func @transform_3(%arg0: i32, %arg1: i32) -> (i32, i32) {
    %c0_i32 = arith.constant 0 : i32
    %c0_i32_0 = arith.constant 0 : i32
    return %c0_i32, %arg0 : i32, i32
  }
  func.func @transform_4(%arg0: i32, %arg1: i32) -> (i32, i32) {
    %c0_i32 = arith.constant 0 : i32
    %c0_i32_0 = arith.constant 0 : i32
    return %c0_i32, %arg0 : i32, i32
  }
  func.func @transform_5(%arg0: i32, %arg1: i32) -> (i32, i32) {
    %c0_i32 = arith.constant 0 : i32
    return %arg1, %arg0 : i32, i32
  }
}

</mosaic_0001>

<bundles_post_ra>
// kernel: graph_decoder_forward.1
= control target key start
LH: loop header
LB: loop body
LE: loop exit
PB: predicated region body
PF: predicated region fallthrough
CT: control target
= control target key end

     0   :  { %v245_v3 = vmov 0.0   ;;  %vm246_vm0 = vmmov 0   ;;  %s330_s0 = inlined_call_operand.vmem [shape: f32[16,32], index: 0, kind: input, shape index: {}]   ;;  %s331_s1 = inlined_call_operand.vmem [shape: f32[32,32], index: 1, kind: input, shape index: {}]   ;;  %s332_s2 = inlined_call_operand.vmem [shape: f32[1,32], index: 2, kind: input, shape index: {}]   ;;  %s333_s3 = inlined_call_operand.vmem [shape: f32[32,128], index: 3, kind: input, shape index: {}]   ;;  %s334_s4 = inlined_call_operand.vmem [shape: f32[1,128], index: 4, kind: input, shape index: {}]   ;;  %s335_s5 = inlined_call_operand.hbm [shape: bf16[16,128], index: 5, kind: output, shape index: {}]  }
   0x1   :  { %v25_v0 = vld [vmem:[%s331_s1] sm:$0xff]  ;;  %v26_v1 = vld [vmem:[%s331_s1 + $0x8] sm:$0xff]  ;;  %v27_v2 = vld [vmem:[%s331_s1 + $0x10] sm:$0xff]  ;;  %196 = vmatprep.subr.bf16.mxu0 %v245_v3  ;;  %200 = vmatprep.mubr.msk.bf16.mxu0 %vm246_vm0, %v245_v3 }
   0x2   :  { %v29_v4 = vpack.c.bf16 %v26_v1, %v25_v0  ;;  %v28_v5 = vld [vmem:[%s331_s1 + $0x18] sm:$0xff]  ;;  %204 = vmatprep.subr.bf16.mxu1 %v245_v3  ;;  %208 = vmatprep.mubr.msk.bf16.mxu1 %vm246_vm0, %v245_v3 }
   0x3   :  { %10 = vsyncpa [#allocation3], 0  ;;  %v30_v6 = vpack.c.bf16 %v28_v5, %v27_v2  ;;  %v22_v7 = vld [vmem:[%s330_s0] sm:$0xff]  ;;  %v23_v8 = vld [vmem:[%s330_s0 + $0x8] sm:$0xff]  ;;  %vm38_vm1 = vcmask 261120  }
   0x4   :  { %197 = vmatpush3.bf16.msra.mxu0 %v29_v4  ;;  %v24_v9 = vpack.c.bf16 %v23_v8, %v22_v7  ;;  %v85_v10 = vld [vmem:[%s333_s3] sm:$0xff]  ;;  %v86_v11 = vld [vmem:[%s333_s3 + $0x8] sm:$0xff]  ;;  %v87_v13 = vld [vmem:[%s333_s3 + $0x10] sm:$0xff] }
   0x5   :  { %198 = vmatprep.subr.bf16.mxu0 %v245_v3  ;;  %v89_v12 = vpack.c.bf16 %v86_v11, %v85_v10  ;;  %v88_v14 = vld [vmem:[%s333_s3 + $0x18] sm:$0xff]  ;;  %v177_v16 = vld [vmem:[%s332_s2] ss:$0 sm:$0xff]  ;;  %s247_s2 = smov [#allocation2]  }
   0x6   :  { %v90_v15 = vpack.c.bf16 %v88_v14, %v87_v13  ;;  %v179_v26 = vld [vmem:[%s334_s4] ss:$0 sm:$0xff]  ;;  %s166_s3 = sshll.u32 %s247_s2, 4  ;;  %s167_s3 = int_to_ptr.vmem [resolvable:$true] %s166_s3 }
   0x7   :  { %205 = vmatpush3.bf16.msra.mxu1 %v89_v12  ;;  %s221_s4 = scalar_lea.vmem %s167_s3, 128  ;;  %p226_p1 = scmp.lt.s32.totalorder %s167_s3, %s167_s3 }
   0x8   :  { %199 = vmatpush3.bf16.msra.mxu0 %v30_v6  ;;  %206 = vmatprep.subr.bf16.mxu1 %v245_v3  ;;  %p222_p0 = scmp.ne.s32.totalorder %s167_s3, %s221_s4  ;;  %p227_p2 = scmp.lt.s32.totalorder %s221_s4, %s221_s4 }
   0xa   :  { %p228_p3 = por %p227_p2, %p226_p1 }
   0xb   :  { %201 = vmatmul.mubr.msk.bf16.vlgmr.msra.gmra.mrb[0].mxu0 %vm38_vm1, %v24_v9  ;;  %207 = vmatpush3.bf16.msra.mxu1 %v90_v15 }
   0xc   :  { %p229_p4 = pnand %p228_p3, %p222_p0 }
  0xde   :  { %v76_v17 = vpop.f32.mrb[0].mxu0 }
  0xdf   :  { %v77_v18 = vadd.f32 %v177_v16, %v76_v17  ;;  %v202_v19 = vpop.f32.mrb[1].mxu0 }
  0xe0   :  { %v79_v20 = vpop.f32.mrb[2].mxu0 }
  0xe1   :  { %v80_v21 = vadd.f32 %v177_v16, %v79_v20  ;;  %v203_v22 = vpop.f32.mrb[3].mxu0  ;;  %v83_v23 = vmax.f32 %v77_v18, 0.0 }
  0xe3   :  { %v84_v24 = vmax.f32 %v80_v21, 0.0 }
  0xe5   :  { %v91_v25 = vpack.c.bf16 %v84_v24, %v83_v23 }
  0xe7   :  { %209 = vmatmul.mubr.msk.bf16.vlgmr.msra.gmra.mrb[0].mxu1 %vm38_vm1, %v91_v25 }
 0x1ba   :  { %v136_v27 = vpop.f32.mrb[0].mxu1 }
 0x1bb   :  { %v137_v28 = vadd.f32 %v179_v26, %v136_v27  ;;  %v210_v29 = vpop.f32.mrb[1].mxu1 }
 0x1bc   :  { %v139_v30 = vpop.f32.mrb[2].mxu1 }
 0x1bd   :  { %v143_v31 = vmul.f32 0.5, %v137_v28  ;;  %v140_v32 = vadd.f32 %v179_v26, %v139_v30  ;;  %v211_v33 = vpop.f32.mrb[3].mxu1 }
 0x1bf   :  { %217 = vtanh.f32 %v143_v31  ;;  %v144_v34 = vmul.f32 0.5, %v140_v32 }
 0x1c1   :  { %219 = vtanh.f32 %v144_v34 }
 0x1c9   :  { %v218_v35 = vpop.eup %217 }
 0x1ca   :  { %v147_v36 = vadd.f32 1.0, %v218_v35 }
 0x1cb   :  { %v220_v37 = vpop.eup %219 }
 0x1cc   :  { %v148_v38 = vadd.f32 1.0, %v220_v37  ;;  %v149_v39 = vmul.f32 0.5, %v147_v36 }
 0x1ce   :  { %v150_v40 = vmul.f32 0.5, %v148_v38 }
 0x1d0   :  { %v188_v41 = vpack.c.bf16 %v150_v40, %v149_v39 }
 0x1d2   :  { %189 = vst [vmem:[#allocation2] sm:$0xff] %v188_v41  }
 0x1d3   :  { %232 = shalt.err (!%p229_p4)
}
 0x1d4   :  { %s233_s17 = scalar_lea.hbm %s335_s5, 128 }
 0x1d5   :  { %p234_p5 = scmp.ne.s32.totalorder %s335_s5, %s233_s17  ;;  %p237_p6 = scmp.lt.u32.totalorder %s233_s17, %s335_s5 }
 0x1d7   :  { %p239_p7 = pnand %p237_p6, %p234_p5 }
 0x1d9   :  { %242 = shalt.err (!%p239_p7)
}
 0x1da   :  { %s248_s22 = smov 64   ;;  %s249_s23 = smov 4  }
 0x1db   :  { %172 = dma.vmem_to_hbm [thread:$0]  %s167_s3, 128, %s335_s5, [#allocation3], %s248_s22, %s248_s22, %s249_s23  }
 0x1dc   :  { %243 = dma.done.wait [#allocation3], 128  }
 0x1dd   :  { %244 = vsyncadd [#allocation3], 4294967168 }
 0x1de   :  { %176 = vsyncpa [#allocation3], 1 }

</bundles_post_ra>
